<compile_context>
chip_gen: v7x
topology: tpu7x:2x2x1
jax: 0.10.0
libtpu: 0.0.40
codegen_flags: <defaults>
</compile_context>

<pallas_src>
import functools

import numpy as np
import jax
import jax.numpy as jnp
from jax.experimental import pallas as pl
from jax.experimental.pallas import tpu as pltpu


# ---------------------------------------------------------------------------
# Tiling helpers
# ---------------------------------------------------------------------------
_LANE = 128
_SUBLANE = 8
# Per-tile targets: 512 x 2048 f32 tile = 4 MiB, x2 double-buffering = 8 MiB,
# well inside the scoped-VMEM budget on every generation (incl. v7x 64 MiB).
_TARGET_SUBLANE = 512
_TARGET_LANE = 2048
_VMEM_LIMIT = 32 * 1024 * 1024


def _pick_tile(n, target, quantum):
    """Largest t <= target with t % quantum == 0 and n % t == 0, else full n.

    Exact divisors avoid garbage reads in padded partial blocks on the
    reduction axis; falling back to the full dim is always a legal block.
    """
    if n <= target:
        return n
    t = (target // quantum) * quantum
    while t >= quantum:
        if n % t == 0:
            return t
        t -= quantum
    return n


# ---------------------------------------------------------------------------
# Kernels
# ---------------------------------------------------------------------------
def _mean_mid_kernel(x_ref, o_ref, acc_ref, *, inv_r):
    """x_ref: (1, TR, TB). Reduce the middle (sublane) axis; lane-dense out."""
    r_idx = pl.program_id(2)

    @pl.when(r_idx == 0)
    def _():
        acc_ref[...] = jnp.zeros_like(acc_ref)

    x = x_ref[...].astype(jnp.float32)          # one widening cast per tile
    acc_ref[...] += jnp.sum(x, axis=1, keepdims=True)

    @pl.when(r_idx == pl.num_programs(2) - 1)
    def _():
        o_ref[...] = (acc_ref[...] * inv_r).astype(o_ref.dtype)


def _mean_lane_kernel(x_ref, o_ref, acc_ref, *, inv_r):
    """x_ref: (TM, TR). Reduce the lane (last) axis."""
    r_idx = pl.program_id(1)

    @pl.when(r_idx == 0)
    def _():
        acc_ref[...] = jnp.zeros_like(acc_ref)

    x = x_ref[...].astype(jnp.float32)
    acc_ref[...] += jnp.sum(x, axis=-1, keepdims=True)

    @pl.when(r_idx == pl.num_programs(1) - 1)
    def _():
        o_ref[...] = (acc_ref[...] * inv_r).astype(o_ref.dtype)


# ---------------------------------------------------------------------------
# pallas_call wrappers
# ---------------------------------------------------------------------------
def _mean_middle(x3):
    """x3: (A, R, B) -> mean over axis 1, returns (A, B)."""
    A, R, B = x3.shape
    tr = _pick_tile(R, _TARGET_SUBLANE, _SUBLANE)
    tb = _pick_tile(B, _TARGET_LANE, _LANE)
    grid = (A, B // tb, R // tr)
    kern = functools.partial(_mean_mid_kernel, inv_r=1.0 / float(R))
    out = pl.pallas_call(
        kern,
        out_shape=jax.ShapeDtypeStruct((A, 1, B), x3.dtype),
        grid_spec=pltpu.PrefetchScalarGridSpec(
            num_scalar_prefetch=0,
            grid=grid,
            in_specs=[pl.BlockSpec((1, tr, tb), lambda a, b, r: (a, r, b))],
            out_specs=pl.BlockSpec((1, 1, tb), lambda a, b, r: (a, 0, b)),
            scratch_shapes=[pltpu.VMEM((1, 1, tb), jnp.float32)],
        ),
        compiler_params=pltpu.CompilerParams(
            dimension_semantics=("parallel", "parallel", "arbitrary"),
            vmem_limit_bytes=_VMEM_LIMIT,
        ),
    )(x3)
    return out.reshape(A, B)


def _mean_suffix(x2):
    """x2: (M, R) -> mean over axis 1, returns (M, 1)."""
    M, R = x2.shape
    tm = _pick_tile(M, _TARGET_SUBLANE, _SUBLANE)
    tr = _pick_tile(R, _TARGET_LANE, _LANE)
    grid = (M // tm, R // tr)
    kern = functools.partial(_mean_lane_kernel, inv_r=1.0 / float(R))
    return pl.pallas_call(
        kern,
        out_shape=jax.ShapeDtypeStruct((M, 1), x2.dtype),
        grid_spec=pltpu.PrefetchScalarGridSpec(
            num_scalar_prefetch=0,
            grid=grid,
            in_specs=[pl.BlockSpec((tm, tr), lambda i, r: (i, r))],
            out_specs=pl.BlockSpec((tm, 1), lambda i, r: (i, 0)),
            scratch_shapes=[pltpu.VMEM((tm, 1), jnp.float32)],
        ),
        compiler_params=pltpu.CompilerParams(
            dimension_semantics=("parallel", "arbitrary"),
            vmem_limit_bytes=_VMEM_LIMIT,
        ),
    )(x2)


def pallas_mean(x, dim, keep_dim=False):
    """Equivalent of torch.Tensor.mean(dim, keepdim) for float inputs."""
    if isinstance(dim, (int, np.integer)):
        dims = (int(dim),)
    else:
        dims = tuple(int(d) for d in dim)
    ndim = x.ndim
    dims = tuple(sorted(set(d % ndim for d in dims)))
    keep_axes = [i for i in range(ndim) if i not in dims]
    keep_shape = tuple(x.shape[i] for i in keep_axes)
    shape = x.shape

    contiguous = all(dims[i + 1] == dims[i] + 1 for i in range(len(dims) - 1))

    if contiguous and dims[-1] < ndim - 1:
        # Contiguous, non-suffix reduction (e.g. channel mean): free reshape to
        # (A, R, B); sublane reduction, lane-dense output, no HBM transpose.
        A = int(np.prod(shape[: dims[0]])) if dims[0] > 0 else 1
        R = int(np.prod(shape[dims[0]: dims[-1] + 1]))
        B = int(np.prod(shape[dims[-1] + 1:]))
        out = _mean_middle(x.reshape(A, R, B)).reshape(keep_shape)
    elif contiguous:
        # Contiguous suffix reduction (e.g. spatial/GAP mean): free reshape to
        # (M, R); lane reduction with R-tiling + resident accumulator.
        M = int(np.prod(keep_shape)) if keep_shape else 1
        R = int(np.prod([shape[d] for d in dims]))
        out = _mean_suffix(x.reshape(M, R)).reshape(keep_shape)
    else:
        # TODO(synk): non-contiguous reduction axes still pay one XLA transpose
        # (one extra HBM read+write); could be folded into the grid with
        # per-axis index maps if this path ever matters for perf.
        xt = jnp.transpose(x, keep_axes + list(dims))
        M = int(np.prod(keep_shape)) if keep_shape else 1
        R = int(np.prod([shape[d] for d in dims]))
        out = _mean_suffix(xt.reshape(M, R)).reshape(keep_shape)

    if keep_dim:
        for d in dims:
            out = jnp.expand_dims(out, d)
    return out


if __name__ == "__main__":
    key = jax.random.PRNGKey(0)
    x = jax.random.normal(key, (2, 4, 16, 16), dtype=jnp.float32)  # NCHW

    cases = [
        ([2, 3], True),   # spatial mean (GAP-style), keep_dim=True
        (1, False),       # channel mean (middle-reduction, lane-dense path)
        (3, False),       # last-axis mean (suffix path)
        ([1, 3], False),  # non-contiguous axes (transpose fallback path)
    ]

    results = []
    for dim, keep in cases:
        y = pallas_mean(x, dim=dim, keep_dim=keep)
        axis = tuple(dim) if isinstance(dim, (list, tuple)) else dim
        ref = jnp.mean(x, axis=axis, keepdims=keep)
        results.append((y, ref))

    jax.block_until_ready([r for pair in results for r in pair])

    for y, ref in results:
        assert y.shape == ref.shape and y.dtype == ref.dtype
        np.testing.assert_allclose(
            np.asarray(y), np.asarray(ref), rtol=1e-5, atol=1e-5
        )

    print("KERNEL_OK")
</pallas_src>

<mosaic_0001>
module attributes {stable_mosaic.version = 11 : i64} {
  func.func @_mean_lane_kernel(%arg0: i32, %arg1: i32, %arg2: memref<8x256xf32, #tpu.memory_space<vmem>>, %arg3: memref<8x1xf32, #tpu.memory_space<vmem>>, %arg4: memref<8x1xf32, #tpu.memory_space<vmem>>) attributes {dimension_semantics = [#tpu.dimension_semantics<parallel>, #tpu.dimension_semantics<arbitrary>], iteration_bounds = array<i64: 1, 1>, scalar_prefetch = 0 : i64, scratch_operands = 1 : i64, tpu.core_type = #tpu.core_type<tc>, window_params = [{transform_indices = @transform_0, window_bounds = array<i64: 8, 256>}, {transform_indices = @transform_1, window_bounds = array<i64: 8, 1>}]} {
    %c0_i32 = arith.constant 0 : i32
    %0 = arith.cmpi eq, %arg1, %c0_i32 : i32
    %1 = arith.extui %0 : i1 to i32
    %c0_i32_0 = arith.constant 0 : i32
    %2 = arith.cmpi ne, %1, %c0_i32_0 : i32
    scf.if %2 {
      %cst_8 = arith.constant 0.000000e+00 : f32
      %12 = vector.broadcast %cst_8 : f32 to vector<8x1xf32>
      %c0_9 = arith.constant 0 : index
      %c0_10 = arith.constant 0 : index
      %13 = vector.load %arg4[%c0_9, %c0_10] : memref<8x1xf32, #tpu.memory_space<vmem>>, vector<8x1xf32>
      tpu.vector_store %arg4[%c0_9, %c0_10], %12 {strides = array<i32>} : memref<8x1xf32, #tpu.memory_space<vmem>>, vector<8x1xf32>,
    } else {
    }
    %c0 = arith.constant 0 : index
    %c0_1 = arith.constant 0 : index
    %3 = vector.load %arg2[%c0, %c0_1] : memref<8x256xf32, #tpu.memory_space<vmem>>, vector<8x256xf32>
    %c0_2 = arith.constant 0 : index
    %c0_3 = arith.constant 0 : index
    %4 = vector.load %arg4[%c0_2, %c0_3] : memref<8x1xf32, #tpu.memory_space<vmem>>, vector<8x1xf32>
    %cst = arith.constant dense<0.000000e+00> : vector<8xf32>
    %5 = vector.multi_reduction <add>, %3, %cst [1] : vector<8x256xf32> to vector<8xf32>
    %6 = vector.shape_cast %5 : vector<8xf32> to vector<8x1xf32>
    %7 = arith.addf %4, %6 : vector<8x1xf32>
    %c0_4 = arith.constant 0 : index
    %c0_5 = arith.constant 0 : index
    %8 = vector.load %arg4[%c0_4, %c0_5] : memref<8x1xf32, #tpu.memory_space<vmem>>, vector<8x1xf32>
    tpu.vector_store %arg4[%c0_4, %c0_5], %7 {strides = array<i32>} : memref<8x1xf32, #tpu.memory_space<vmem>>, vector<8x1xf32>,
    %c0_i32_6 = arith.constant 0 : i32
    %9 = arith.cmpi eq, %arg1, %c0_i32_6 : i32
    %10 = arith.extui %9 : i1 to i32
    %c0_i32_7 = arith.constant 0 : i32
    %11 = arith.cmpi ne, %10, %c0_i32_7 : i32
    scf.if %11 {
      %c0_8 = arith.constant 0 : index
      %c0_9 = arith.constant 0 : index
      %12 = vector.load %arg4[%c0_8, %c0_9] : memref<8x1xf32, #tpu.memory_space<vmem>>, vector<8x1xf32>
      %cst_10 = arith.constant 3.906250e-03 : f32
      %13 = vector.broadcast %cst_10 : f32 to vector<8x1xf32>
      %14 = arith.mulf %12, %13 : vector<8x1xf32>
      %c0_11 = arith.constant 0 : index
      %c0_12 = arith.constant 0 : index
      %15 = vector.load %arg3[%c0_11, %c0_12] : memref<8x1xf32, #tpu.memory_space<vmem>>, vector<8x1xf32>
      tpu.vector_store %arg3[%c0_11, %c0_12], %14 {strides = array<i32>} : memref<8x1xf32, #tpu.memory_space<vmem>>, vector<8x1xf32>,
    } else {
    }
    return
  }
  func.func @transform_0(%arg0: i32, %arg1: i32) -> (i32, i32) {
    %c0_i32 = arith.constant 0 : i32
    return %arg0, %arg1 : i32, i32
  }
  func.func @transform_1(%arg0: i32, %arg1: i32) -> (i32, i32) {
    %c0_i32 = arith.constant 0 : i32
    %c0_i32_0 = arith.constant 0 : i32
    return %arg0, %c0_i32 : i32, i32
  }
}

</mosaic_0001>

<bundles_post_ra>
// kernel: tpu_custom_call.1
= control target key start
LH: loop header
LB: loop body
LE: loop exit
PB: predicated region body
PF: predicated region fallthrough
CT: control target
= control target key end

     0   :  { %6 = vsyncpa [#allocation4], 0  ;;  %s72_s6 = smov [#allocation3]   ;;  %s99_s0 = inlined_call_operand.hbm [shape: f32[8,256], index: 0, kind: input, shape index: {}]   ;;  %s100_s1 = inlined_call_operand.vmem [shape: f32[8,1], index: 1, kind: output, shape index: {}]  }
   0x1   :  { %s13_s7 = sshll.u32 %s72_s6, 4  ;;  %s48_s10 = scalar_lea.hbm %s99_s0, 256  ;;  %s14_s7 = int_to_ptr.vmem [resolvable:$true] %s13_s7 }
   0x2   :  { %p49_p0 = scmp.ne.s32.totalorder %s99_s0, %s48_s10  ;;  %p52_p1 = scmp.lt.u32.totalorder %s48_s10, %s99_s0 }
   0x4   :  { %p54_p2 = pnand %p52_p1, %p49_p0 }
   0x6   :  { %57 = shalt.err (!%p54_p2)
}
   0x7   :  { %s58_s15 = scalar_lea.vmem %s14_s7, 256  ;;  %p63_p4 = scmp.lt.s32.totalorder %s14_s7, %s14_s7 }
   0x8   :  { %p59_p3 = scmp.ne.s32.totalorder %s14_s7, %s58_s15  ;;  %p64_p5 = scmp.lt.s32.totalorder %s58_s15, %s58_s15 }
   0xa   :  { %p65_p6 = por %p64_p5, %p63_p4 }
   0xc   :  { %p66_p7 = pnand %p65_p6, %p59_p3 }
   0xe   :  { %69 = shalt.err (!%p66_p7)
}
   0xf   :  { %16 = dma.hbm_to_vmem [thread:$0]  %s99_s0, 256, %s14_s7, [#allocation4]  }
  0x10   :  { %70 = dma.done.wait [#allocation4], 256  }
  0x11   :  { %71 = vsyncadd [#allocation4], 4294967040  ;;  %vm24_vm0 = vcmask 7168   ;;  %v73_v0 = vmov 0.0   ;;  %v26_v1 = vld [vmem:[#allocation3] sm:$0xff]  ;;  %v27_v2 = vld [vmem:[#allocation3 + $0x8] sm:$0xff] }
  0x12   :  { %25 = vst.msk [vmem:[#allocation2] sm:$0xff] %vm24_vm0, %v73_v0  ;;  %v29_v3 = vadd.f32 %v27_v2, %v26_v1 }
  0x14   :  { %30 = vadd.xlane.f32.xlu0 %v29_v3 }
  0x19   :  { %v28_v4 = vld [vmem:[#allocation2] sm:$0xff] }
  0xa1   :  { %v31_v5 = vpop.xlane.xlu0 %30 }
  0xa2   :  { %v32_v6 = vadd.f32 %v31_v5, %v28_v4 }
  0xa4   :  { %34 = vst.msk [vmem:[#allocation2] sm:$0xff] %vm24_vm0, %v32_v6 }
  0xab   :  { %v38_v7 = vld [vmem:[#allocation2] sm:$0xff] }
  0xac   :  { %v39_v8 = vmul.f32 0.00390625, %v38_v7 }
  0xae   :  { %40 = vst.msk [vmem:[%s100_s1] sm:$0xff] %vm24_vm0, %v39_v8 }
  0xaf   :  { %45 = vsyncpa [#allocation4], 1 }

</bundles_post_ra>
